<compile_context>
chip_gen: v6e
topology: v6e:2x2x1
jax: 0.10.0
libtpu: 0.0.40
codegen_flags: <defaults>
</compile_context>

<pallas_src>
import functools

import jax
import jax.numpy as jnp
from jax import lax
from jax.experimental import pallas as pl
from jax.experimental.pallas import tpu as pltpu

MAX_ITER = 5      # matches GTG(..., max_iter=5)
LANE = 128


def _round_up(x, m):
    return ((x + m - 1) // m) * m


# --------------------------------------------------------------------------
# Pass 1: W = relu( cosine similarity of mean-centered rows ), tiled (i, j).
# --------------------------------------------------------------------------
def _w_kernel(xi_ref, xj_ref, w_ref, *, n_valid, tile, matmul_dtype):
    i = pl.program_id(0)
    j = pl.program_id(1)

    def centered_unit_rows(x_raw, pid):
        x = x_raw.astype(jnp.float32)
        xc = x - jnp.mean(x, axis=1, keepdims=True)          # center (dim=1)
        ssq = jnp.sum(xc * xc, axis=1, keepdims=True)         # (tile, 1)
        rows = pid * tile + lax.broadcasted_iota(jnp.int32, (tile, 1), 0)
        # rsqrt runs on the EUP (free VLIW slot). Padded rows get inv = 0 so
        # they contribute exactly 0 to W; genuinely zero-norm real rows still
        # produce NaN like the PyTorch reference (division by zero).
        inv = jnp.where(rows < n_valid, lax.rsqrt(ssq), 0.0)
        return (xc * inv).astype(matmul_dtype)

    a = centered_unit_rows(xi_ref[...], i)                    # (tile, d)
    b = centered_unit_rows(xj_ref[...], j)                    # (tile, d)
    # Contract both operands on d (A @ B^T) — no explicit transposed copy.
    g = lax.dot_general(a, b, (((1,), (1,)), ((), ())),
                        preferred_element_type=jnp.float32)
    w_ref[...] = jnp.maximum(g, 0.0).astype(w_ref.dtype)      # F.relu


# --------------------------------------------------------------------------
# Pass 2: replicator dynamics  X <- normalize(X * (W @ X)),  max_iter times.
# Grid = (iteration, row-tile i, col-tile j); W tiles are streamed from HBM,
# the full ps matrix lives in VMEM scratch (ps_old read / ps_new written).
# --------------------------------------------------------------------------
def _replicator_kernel(ps0_ref, w_ref, ps_ref, ps_old, ps_new, acc,
                       *, n_valid, tile, matmul_dtype, approx_recip):
    it = pl.program_id(0)
    i = pl.program_id(1)
    j = pl.program_id(2)
    last_j = pl.num_programs(2) - 1

    at_iter_start = jnp.logical_and(i == 0, j == 0)

    @pl.when(jnp.logical_and(at_iter_start, it == 0))
    def _():  # load initial probabilities once
        ps_old[...] = ps0_ref[...].astype(jnp.float32)

    @pl.when(jnp.logical_and(at_iter_start, it > 0))
    def _():  # previous iteration's result becomes this iteration's input
        ps_old[...] = ps_new[...]

    @pl.when(j == 0)
    def _():
        acc[...] = jnp.zeros_like(acc)

    off_j = pl.multiple_of(j * tile, tile)
    w_tile = w_ref[...].astype(matmul_dtype)                       # (tile, tile)
    p_blk = ps_old[pl.ds(off_j, tile), :].astype(matmul_dtype)     # (tile, m_pad)
    acc[...] += jnp.dot(w_tile, p_blk, preferred_element_type=jnp.float32)

    @pl.when(j == last_j)
    def _():
        off_i = pl.multiple_of(i * tile, tile)
        p_old = ps_old[pl.ds(off_i, tile), :]                      # f32
        p = p_old * acc[...]                                       # X * (W @ X)
        denom = jnp.sum(p, axis=-1, keepdims=True)
        rows = i * tile + lax.broadcasted_iota(jnp.int32, (tile, 1), 0)
        denom = jnp.where(rows < n_valid, denom, 1.0)              # padded rows stay 0
        if approx_recip:
            p = p * pl.reciprocal(denom, approx=True)              # EUP vrcp
        else:
            p = p / denom
        ps_new[pl.ds(off_i, tile), :] = p
        ps_ref[...] = p.astype(ps_ref.dtype)


# --------------------------------------------------------------------------
# Wrapper
# --------------------------------------------------------------------------
def gtg_forward(fc7, ps_init, *, max_iter=MAX_ITER, tile=128,
                matmul_dtype=jnp.bfloat16, approx_recip=True):
    """fc7: (n, d), ps_init: (n, m)  ->  (ps (n, m) f32, W (n, n) f32)."""
    assert max_iter >= 1
    n, d = fc7.shape
    m = ps_init.shape[1]

    n_pad = _round_up(max(n, tile), tile)
    m_pad = _round_up(max(m, LANE), LANE)          # lane-dense class axis
    n_tiles = n_pad // tile

    x = jnp.zeros((n_pad, d), fc7.dtype).at[:n, :].set(fc7)
    ps0 = jnp.zeros((n_pad, m_pad), jnp.float32).at[:n, :m].set(
        ps_init.astype(jnp.float32))

    # ---- pass 1: similarity matrix W -------------------------------------
    w_working_set = 2 * (2 * tile * d * 4) + 2 * tile * tile * 4
    w_full = pl.pallas_call(
        functools.partial(_w_kernel, n_valid=n, tile=tile,
                          matmul_dtype=matmul_dtype),
        out_shape=jax.ShapeDtypeStruct((n_pad, n_pad), jnp.float32),
        grid=(n_tiles, n_tiles),
        in_specs=[pl.BlockSpec((tile, d), lambda i, j: (i, 0)),
                  pl.BlockSpec((tile, d), lambda i, j: (j, 0))],
        out_specs=pl.BlockSpec((tile, tile), lambda i, j: (i, j)),
        compiler_params=pltpu.CompilerParams(
            dimension_semantics=("parallel", "parallel"),
            vmem_limit_bytes=max(32 * 1024 * 1024, 2 * w_working_set)),
    )(x, x)

    # ---- pass 2: replicator dynamics --------------------------------------
    scratch_bytes = (2 * n_pad * m_pad + tile * m_pad) * 4
    io_bytes = (2 * n_pad * m_pad + 2 * tile * tile + 2 * tile * m_pad) * 4
    ps_full = pl.pallas_call(
        functools.partial(_replicator_kernel, n_valid=n, tile=tile,
                          matmul_dtype=matmul_dtype, approx_recip=approx_recip),
        out_shape=jax.ShapeDtypeStruct((n_pad, m_pad), jnp.float32),
        grid=(max_iter, n_tiles, n_tiles),
        in_specs=[pl.BlockSpec((n_pad, m_pad), lambda it, i, j: (0, 0)),
                  pl.BlockSpec((tile, tile), lambda it, i, j: (i, j))],
        out_specs=pl.BlockSpec((tile, m_pad), lambda it, i, j: (i, 0)),
        scratch_shapes=[pltpu.VMEM((n_pad, m_pad), jnp.float32),   # ps_old
                        pltpu.VMEM((n_pad, m_pad), jnp.float32),   # ps_new
                        pltpu.VMEM((tile, m_pad), jnp.float32)],   # acc
        compiler_params=pltpu.CompilerParams(
            dimension_semantics=("arbitrary", "arbitrary", "arbitrary"),
            vmem_limit_bytes=max(32 * 1024 * 1024,
                                 2 * (scratch_bytes + io_bytes))),
    )(ps0, w_full)

    return ps_full[:n, :m], w_full[:n, :n]


# --------------------------------------------------------------------------
# Host-side glue (probability init) + pure-JAX reference for self-checking.
# TODO(synk): _init_probs_prior / _init_probs_prior_only_classes are plain
#             scatter glue (no kernel work); only the uniform path is provided.
# --------------------------------------------------------------------------
def init_probs_uniform(n, m, labs, L, U):
    ps = jnp.zeros((n, m), dtype=jnp.float32)
    ps = ps.at[jnp.asarray(U), :].set(1.0 / m)
    ps = ps.at[jnp.asarray(L), jnp.asarray(labs)].set(1.0)
    return ps


def gtg_reference(fc7, ps_init, max_iter=MAX_ITER):
    xc = fc7 - fc7.mean(axis=1, keepdims=True)
    norms = jnp.linalg.norm(xc, axis=1)
    w = (xc @ xc.T) / jnp.outer(norms, norms)
    w = jnp.maximum(w, 0.0)
    ps = ps_init
    for _ in range(max_iter):
        ps = ps * (w @ ps)
        ps = ps / ps.sum(axis=-1, keepdims=True)
    return ps, w


if __name__ == "__main__":
    # Small but non-trivial shapes: n=300 exercises row padding (-> 384) and a
    # 3x3 W tile grid; m=10 exercises the lane-dense class padding (-> 128).
    n, d, m = 300, 128, 10
    key = jax.random.PRNGKey(0)
    k_x, k_lab = jax.random.split(key)

    fc7 = jax.random.normal(k_x, (n, d), dtype=jnp.float32)
    n_lab = n // 2
    L = jnp.arange(0, n_lab)                 # labeled point indices
    U = jnp.arange(n_lab, n)                 # unlabeled point indices
    labs = jax.random.randint(k_lab, (n_lab,), 0, m)
    ps0 = init_probs_uniform(n, m, labs, L, U)

    ps_ref, w_ref = gtg_reference(fc7, ps0)

    # Exact path: f32 MXU operands + exact reciprocal — matches reference tightly.
    ps_f32, w_f32 = gtg_forward(fc7, ps0, matmul_dtype=jnp.float32,
                                approx_recip=False)
    jax.block_until_ready((ps_f32, w_f32))
    assert jnp.allclose(w_f32, w_ref, atol=1e-4, rtol=1e-4), "W mismatch (f32)"
    assert jnp.allclose(ps_f32, ps_ref, atol=1e-4, rtol=1e-4), "ps mismatch (f32)"

    # Fast path (default): bf16 MXU operands with f32 accumulation + EUP
    # approximate reciprocal — same computation at reduced matmul precision.
    ps_fast, w_fast = gtg_forward(fc7, ps0)
    jax.block_until_ready((ps_fast, w_fast))
    assert jnp.allclose(w_fast, w_ref, atol=5e-2, rtol=5e-2), "W mismatch (bf16)"
    assert jnp.allclose(ps_fast, ps_ref, atol=5e-2, rtol=5e-2), "ps mismatch (bf16)"

    print("KERNEL_OK")
</pallas_src>

<mosaic_0001>
module attributes {stable_mosaic.version = 11 : i64} {
  func.func @_w_kernel(%arg0: i32, %arg1: i32, %arg2: memref<128x128xf32, #tpu.memory_space<vmem>>, %arg3: memref<128x128xf32, #tpu.memory_space<vmem>>, %arg4: memref<128x128xf32, #tpu.memory_space<vmem>>) attributes {dimension_semantics = [#tpu.dimension_semantics<parallel>, #tpu.dimension_semantics<parallel>], iteration_bounds = array<i64: 3, 3>, scalar_prefetch = 0 : i64, scratch_operands = 0 : i64, tpu.core_type = #tpu.core_type<tc>, window_params = [{transform_indices = @transform_0, window_bounds = array<i64: 128, 128>}, {transform_indices = @transform_1, window_bounds = array<i64: 128, 128>}, {transform_indices = @transform_2, window_bounds = array<i64: 128, 128>}]} {
    %c0 = arith.constant 0 : index
    %c0_0 = arith.constant 0 : index
    %0 = vector.load %arg2[%c0, %c0_0] : memref<128x128xf32, #tpu.memory_space<vmem>>, vector<128x128xf32>
    %cst = arith.constant dense<0.000000e+00> : vector<128xf32>
    %1 = vector.multi_reduction <add>, %0, %cst [1] : vector<128x128xf32> to vector<128xf32>
    %2 = vector.shape_cast %1 : vector<128xf32> to vector<128x1xf32>
    %cst_1 = arith.constant 1.280000e+02 : f32
    %3 = vector.broadcast %cst_1 : f32 to vector<128x1xf32>
    %4 = arith.divf %2, %3 : vector<128x1xf32>
    %5 = vector.broadcast %4 : vector<128x1xf32> to vector<128x128xf32>
    %6 = arith.subf %0, %5 : vector<128x128xf32>
    %7 = arith.mulf %6, %6 : vector<128x128xf32>
    %cst_2 = arith.constant dense<0.000000e+00> : vector<128xf32>
    %8 = vector.multi_reduction <add>, %7, %cst_2 [1] : vector<128x128xf32> to vector<128xf32>
    %9 = vector.shape_cast %8 : vector<128xf32> to vector<128x1xf32>
    %c128_i32 = arith.constant 128 : i32
    %10 = arith.muli %arg0, %c128_i32 : i32
    %11 = tpu.iota {dimensions = array<i32: 0>} : vector<128x1xi32>
    %12 = vector.broadcast %10 : i32 to vector<128x1xi32>
    %13 = arith.addi %12, %11 : vector<128x1xi32>
    %c300_i32 = arith.constant 300 : i32
    %14 = vector.broadcast %c300_i32 : i32 to vector<128x1xi32>
    %15 = arith.cmpi slt, %13, %14 : vector<128x1xi32>
    %16 = math.rsqrt %9 : vector<128x1xf32>
    %cst_3 = arith.constant 0.000000e+00 : f32
    %17 = vector.broadcast %cst_3 : f32 to vector<128x1xf32>
    %18 = arith.select %15, %16, %17 : vector<128x1xi1>, vector<128x1xf32>
    %19 = vector.broadcast %18 : vector<128x1xf32> to vector<128x128xf32>
    %20 = arith.mulf %6, %19 : vector<128x128xf32>
    %c0_4 = arith.constant 0 : index
    %c0_5 = arith.constant 0 : index
    %21 = vector.load %arg3[%c0_4, %c0_5] : memref<128x128xf32, #tpu.memory_space<vmem>>, vector<128x128xf32>
    %cst_6 = arith.constant dense<0.000000e+00> : vector<128xf32>
    %22 = vector.multi_reduction <add>, %21, %cst_6 [1] : vector<128x128xf32> to vector<128xf32>
    %23 = vector.shape_cast %22 : vector<128xf32> to vector<128x1xf32>
    %cst_7 = arith.constant 1.280000e+02 : f32
    %24 = vector.broadcast %cst_7 : f32 to vector<128x1xf32>
    %25 = arith.divf %23, %24 : vector<128x1xf32>
    %26 = vector.broadcast %25 : vector<128x1xf32> to vector<128x128xf32>
    %27 = arith.subf %21, %26 : vector<128x128xf32>
    %28 = arith.mulf %27, %27 : vector<128x128xf32>
    %cst_8 = arith.constant dense<0.000000e+00> : vector<128xf32>
    %29 = vector.multi_reduction <add>, %28, %cst_8 [1] : vector<128x128xf32> to vector<128xf32>
    %30 = vector.shape_cast %29 : vector<128xf32> to vector<128x1xf32>
    %c128_i32_9 = arith.constant 128 : i32
    %31 = arith.muli %arg1, %c128_i32_9 : i32
    %32 = tpu.iota {dimensions = array<i32: 0>} : vector<128x1xi32>
    %33 = vector.broadcast %31 : i32 to vector<128x1xi32>
    %34 = arith.addi %33, %32 : vector<128x1xi32>
    %c300_i32_10 = arith.constant 300 : i32
    %35 = vector.broadcast %c300_i32_10 : i32 to vector<128x1xi32>
    %36 = arith.cmpi slt, %34, %35 : vector<128x1xi32>
    %37 = math.rsqrt %30 : vector<128x1xf32>
    %cst_11 = arith.constant 0.000000e+00 : f32
    %38 = vector.broadcast %cst_11 : f32 to vector<128x1xf32>
    %39 = arith.select %36, %37, %38 : vector<128x1xi1>, vector<128x1xf32>
    %40 = vector.broadcast %39 : vector<128x1xf32> to vector<128x128xf32>
    %41 = arith.mulf %27, %40 : vector<128x128xf32>
    %cst_12 = arith.constant dense<0.000000e+00> : vector<128x128xf32>
    %42 = tpu.matmul %20, %41, %cst_12 {dimension_numbers = #tpu.dot_dimension_numbers<[1], [1], [0], [0], [0, 0, 1, 0], [], []>} : vector<128x128xf32>, vector<128x128xf32>, vector<128x128xf32> -> vector<128x128xf32>
    %cst_13 = arith.constant 0.000000e+00 : f32
    %43 = vector.broadcast %cst_13 : f32 to vector<128x128xf32>
    %44 = arith.maximumf %42, %43 : vector<128x128xf32>
    %c0_14 = arith.constant 0 : index
    %c0_15 = arith.constant 0 : index
    %45 = vector.load %arg4[%c0_14, %c0_15] : memref<128x128xf32, #tpu.memory_space<vmem>>, vector<128x128xf32>
    tpu.vector_store %arg4[%c0_14, %c0_15], %44 {strides = array<i32>} : memref<128x128xf32, #tpu.memory_space<vmem>>, vector<128x128xf32>,
    return
  }
  func.func @transform_0(%arg0: i32, %arg1: i32) -> (i32, i32) {
    %c0_i32 = arith.constant 0 : i32
    %c0_i32_0 = arith.constant 0 : i32
    return %arg0, %c0_i32 : i32, i32
  }
  func.func @transform_1(%arg0: i32, %arg1: i32) -> (i32, i32) {
    %c0_i32 = arith.constant 0 : i32
    %c0_i32_0 = arith.constant 0 : i32
    return %arg1, %c0_i32 : i32, i32
  }
  func.func @transform_2(%arg0: i32, %arg1: i32) -> (i32, i32) {
    %c0_i32 = arith.constant 0 : i32
    return %arg0, %arg1 : i32, i32
  }
}

</mosaic_0001>

<bundles_post_ra>
// kernel: tpu_custom_call.1
= control target key start
LH: loop header
LB: loop body
LE: loop exit
PB: predicated region body
PF: predicated region fallthrough
CT: control target
= control target key end

     0   :  { %s2309_s0 = inlined_call_operand.hbm [shape: f32[384,128], index: 0, kind: input, shape index: {}]   ;;  %s2310_s1 = inlined_call_operand.hbm [shape: f32[384,128], index: 1, kind: input, shape index: {}]   ;;  %s2311_s2 = inlined_call_operand.hbm [shape: f32[384,384], index: 2, kind: output, shape index: {}]  }
   0x1   :  { %2320 = sst [smem:[#allocation16_spill]] %s2309_s0 }
   0x2   :  { %2321 = sst [smem:[#allocation17_spill]] %s2310_s1 }
   0x3   :  { %7 = vsyncpa [#allocation3], 0 }
   0x4   :  { %9 = vsyncpa [#allocation3 + $0x1], 0 }
   0x5   :  { %10 = vsyncpa [#allocation6], 0 }
   0x6   :  { %12 = vsyncpa [#allocation6 + $0x1], 0 }
   0x7   :  { %13 = vsyncpa [#allocation4], 0 }
   0x8   :  { %15 = vsyncpa [#allocation4 + $0x1], 0  ;;  %s1533_s9 = smov 0   ;;  %s1535_s10 = smov 0  }
   0x9   :  { %s1537_s11 = smov 0   ;;  %s1539_s12 = smov 0  }
   0xa   :  { %s1541_s13 = smov 0   ;;  %s1543_s14 = smov 0  }
   0xb   :  { %s1545_s15 = smov 0   ;;  %s1547_s16 = smov 0  }
   0xc   :  { %s1549_s17 = smov 0   ;;  %s1551_s18 = smov 0  }
   0xd   :  { %s1553_s19 = smov 0   ;;  %s1555_s20 = smov 0  }
   0xe   :  { %s1557_s21 = smov 0   ;;  %s1559_s22 = smov 0  }
   0xf LB: > { %2322 = sst [smem:[#allocation11_spill]] %s1500_s20  ;;  %s2312_s23 = sadd.s32 4294967295, %s1508_s22   ;;  %s1508_s22 = sphi %s1559_s22, %s21_s22   ;;  %s1504_s21 = sphi %s1557_s21, %s2350_s21   ;;  %s1500_s20 = sphi %s1555_s20, %s2349_s20   ;;  %s1496_s19 = sphi %s1553_s19, %s2348_s19   ;;  %s1492_s18 = sphi %s1551_s18, %s2347_s18   ;;  %s1488_s17 = sphi %s1549_s17, %s2359_s17   ;;  %s1484_s16 = sphi %s1547_s16, %s2358_s16   ;;  %s1480_s15 = sphi %s1545_s15, %s2357_s15   ;;  %s1476_s14 = sphi %s1543_s14, %s2356_s14   ;;  %s1472_s13 = sphi %s1541_s13, %s2355_s13   ;;  %s1468_s12 = sphi %s1539_s12, %s2354_s12   ;;  %s1464_s11 = sphi %s1537_s11, %s2353_s11   ;;  %s1460_s10 = sphi %s1535_s10, %s2352_s10   ;;  %s1456_s9 = sphi %s1533_s9, %s2351_s9  }
  0x10   : > { %2323 = sst [smem:[#allocation12_spill]] %s1504_s21  ;;  %p47_p0 = scmp.ne.s32.totalorder %s1488_s17, %s1484_s16 }
  0x11   : > { %p48_p1 = scmp.eq.s32.totalorder %s1508_s22, 0  ;;  %p53_p2 = scmp.ne.s32.totalorder %s1484_s16, %s1480_s15 }
  0x12   : > { %p1610_p3 = scmp.eq.s32.totalorder %s2312_s23, 0  ;;  %p1121_p6 = scmp.lt.s32.totalorder %s1508_s22, 9 }
  0x13   : > { %p49_p4 = por %p48_p1, %p47_p0  ;;  %s131_s28 = sand.u32 1, %s1488_s17  }
  0x14   : > { %p1618_p5 = por %p1610_p3, %p53_p2  ;;  %s981_s29 = sshll.u32 %s1504_s21, 11 }
  0x15   : > { %s963_s30 = sshll.u32 %s131_s28, 7  ;;  %s2326_s0 = sld [smem:[#allocation16_spill]] }
  0x16   : > { %s135_s6 = scalar_lea.vmem [#allocation2], %s963_s30  ;;  %p1630_p7 = pnand %p1121_p6, %p49_p4 }
  0x17   : > { %s142_s7 = sshll.u32 %s135_s6, 4  ;;  %s132_s15 = scalar_lea.sflag [#allocation3], %s131_s28  ;;  %s143_s7 = int_to_ptr.vmem [resolvable:$true] %s142_s7 }
  0x18   : > { %p1306_p8 = pneg %p1630_p7  ;;  %s1317_s25 = scalar_lea.vmem %s143_s7, 2048 }
  0x19   : > { %p1318_p9 = scmp.ne.s32.totalorder %s143_s7, %s1317_s25  ;;  %s1510_s24 = smov [#allocation2]  }
  0x1a   : > { %s1322_s23 = sshll.u32 %s1510_s24, 4  ;;  %s1323_s23 = int_to_ptr.vmem [resolvable:$false] %s1322_s23 }
  0x1b   : > { %s141_s5 = scalar_lea.hbm %s2326_s0, %s981_s29  ;;  %p1320_p10 = pnand %p1318_p9, %p1306_p8 }
  0x1c   : > { %s1324_s29 = scalar_lea.vmem %s1323_s23, 4096  ;;  %p1325_p12 = scmp.lt.s32.totalorder %s143_s7, %s1323_s23 }
  0x1d   : > { %p1321_p11 = pneg %p1320_p10  ;;  %p1326_p13 = scmp.lt.s32.totalorder %s1324_s29, %s1317_s25 }
  0x1f   : > { %p1327_p0 = por %p1326_p13, %p1325_p12 }
  0x21   : > { %p1328_p2 = pnand %p1327_p0, %p1321_p11 }
  0x23   : > { %1331 = shalt.err (!%p1328_p2)
}
  0x24   : > { %s2313_s30 = smov 128   ;;  %s2314_s23 = smov 8  }
  0x25   : > { %1113 = dma.hbm_to_vmem [thread:$0]  (!%p1630_p7), %s141_s5, 2048, %s143_s7, %s132_s15, %s2313_s30, %s2313_s30, %s2314_s23  }
  0x26   : > { %p969_p4 = scmp.ge.s32.totalorder %s1508_s22, 1  ;;  %p171_p8 = scmp.lt.s32.totalorder %s1508_s22, 10 }
  0x27   : > { %s2328_s24 = sadd.s32 4294967295, %s1508_s22   ;;  %s960_s3 = sadd.s32 4294967294, %s1508_s22  }
  0x28   : > { %p1645_p9 = scmp.eq.s32.totalorder %s2328_s24, 8  ;;  %p1649_p10 = pnand %p969_p4, %p171_p8 }
  0x29   : > { %s30_s4 = sadd.s32 1, %s1500_s20  ;;  %s66_s5 = sadd.s32 1, %s1476_s14 }
  0x2a   : > { %p31_p7 = scmp.ge.s32.totalorder %s30_s4, 3  ;;  %p73_p11 = scmp.ne.s32.totalorder %s1476_s14, %s1472_s13 }
  0x2b   : > { %p79_p12 = scmp.ne.s32.totalorder %s1472_s13, %s1468_s12  ;;  %s2332_s6 = sadd.s32 1, %s1504_s21 }
  0x2c   : > { %s2361_s4 = smov (%p31_p7, %s30_s4), 0  ;;  %s2363_s6 = smov (!%p31_p7, %s2332_s6), %s1504_s21 }
  0x2d   : > { %2331 = sst [smem:[#allocation13_spill]] %s2361_s4  ;;  %s63_s7 = ssub.s32 %s1500_s20, %s2361_s4 }
  0x2e   : > { %s94_s8 = sadd.s32 1, %s1464_s11  ;;  %p35_p13 = scmp.ge.s32.totalorder %s2363_s6, 3 }
  0x2f   : > { %p64_p0 = scmp.eq.s32.totalorder %s63_s7, 0  ;;  %p1670_p2 = por %p79_p12, %p1610_p3 }
  0x30   : > { %p104_p4 = scmp.ne.s32.totalorder %s1464_s11, %s1460_s10  ;;  %s2365_s6 = smov (%p35_p13, %s2363_s6), 0 }
  0x31   : > { %2334 = sst [smem:[#allocation14_spill]] %s2365_s6  ;;  %s37_s29 = ssub.s32 %s1504_s21, %s2365_s6 }
  0x32   : > { %s1679_s15 = scalar_select %p64_p0, %s1476_s14, %s66_s5  }
  0x33   : > { %p1685_p8 = por %p1645_p9, %p104_p4  ;;  %p38_p7 = scmp.eq.s32.totalorder %s37_s29, 0 }
  0x34   : > { %s91_s26 = sor.u32 %s63_s7, %s37_s29  ;;  %p110_p12 = scmp.ne.s32.totalorder %s1460_s10, %s1456_s9 }
  0x35   : > { %s2335_s24 = scalar_select %p1685_p8, 1, 0 }
  0x36   : > { %p92_p3 = scmp.eq.s32.totalorder %s91_s26, 0  ;;  %s2336_s30 = sadd.s32 1, %s1488_s17 }
  0x37   : > { %s1694_s23 = scalar_select %p38_p7, %s1488_s17, %s2336_s30  }
  0x38   : > { %s1697_s0 = scalar_select %p92_p3, %s1464_s11, %s94_s8  }
  0x39   : > { %2337 = sst [smem:[#allocation15_spill]] %s1694_s23  ;;  %p111_p13 = scmp.eq.s32.totalorder %s960_s3, 8 }
  0x3a   : > { %s152_s4 = sand.u32 1, %s1476_s14   ;;  %p75_p0 = por %p73_p11, %p48_p1 }
  0x3b   : > { %s966_s25 = sshll.u32 %s152_s4, 7  ;;  %p1705_p9 = por %p111_p13, %p110_p12 }
  0x3c   : > { %s982_s6 = sshll.u32 %s1500_s20, 11  ;;  %s156_s21 = scalar_lea.vmem [#allocation5], %s966_s25 }
  0x3d   : > { %s2338_s5 = scalar_select %p1705_p9, 1, 0 }
  0x3e   : > { %s163_s7 = sshll.u32 %s156_s21, 4  ;;  %s2339_s1 = sld [smem:[#allocation17_spill]]  ;;  %s164_s7 = int_to_ptr.vmem [resolvable:$true] %s163_s7 }
  0x3f   : > { %p1715_p4 = pnand %p1121_p6, %p75_p0  ;;  %s153_s8 = scalar_lea.sflag [#allocation6], %s152_s4 }
  0x40   : > { %s1345_s23 = scalar_lea.vmem %s164_s7, 2048  ;;  %s1513_s25 = smov [#allocation5]  }
  0x41   : > { %p1334_p1 = pneg %p1715_p4  ;;  %p1346_p11 = scmp.ne.s32.totalorder %s164_s7, %s1345_s23 }
  0x42   : > { %s1350_s21 = sshll.u32 %s1513_s25, 4  ;;  %s1351_s21 = int_to_ptr.vmem [resolvable:$false] %s1350_s21 }
  0x43   : > { %p1348_p7 = pnand %p1346_p11, %p1334_p1  ;;  %s1352_s20 = scalar_lea.vmem %s1351_s21, 4096 }
  0x44   : > { %s162_s30 = scalar_lea.hbm %s2339_s1, %s982_s6  ;;  %p1353_p12 = scmp.lt.s32.totalorder %s164_s7, %s1351_s21 }
  0x45   : > { %p1349_p3 = pneg %p1348_p7  ;;  %p1354_p13 = scmp.lt.s32.totalorder %s1352_s20, %s1345_s23 }
  0x47   : > { %p1355_p9 = por %p1354_p13, %p1353_p12 }
  0x49   : > { %p1356_p8 = pnand %p1355_p9, %p1349_p3 }
  0x4b   : > { %1359 = shalt.err (!%p1356_p8)
}
  0x4c   : > { %s2341_s6 = smov 8   ;;  %s2342_s29 = smov 128  }
  0x4d   : > { %1116 = dma.hbm_to_vmem [thread:$0]  (!%p1715_p4), %s162_s30, 2048, %s164_s7, %s153_s8, %s2342_s29, %s2342_s29, %s2341_s6  }
  0x4e   : > { %175 = sbr.rel (%p1649_p10) target bundleno = 676 (0x2a4), region = 28  ;;  %s177_s4 = sand.u32 (!%p1649_p10), 1, %s1484_s16  }
  0x4f   : > { %s970_s26 = sshll.u32 (!%p1649_p10), %s177_s4, 7  ;;  %s178_s25 = scalar_lea.sflag (!%p1649_p10), [#allocation3], %s177_s4 }
  0x50   : > { %s1729_s1 = scalar_lea.vmem (!%p1649_p10), [#allocation2], %s970_s26 }
  0x53   : > { %1443 = dma.done.wait (%p1618_p5), %s178_s25, 2048  }
  0x54   : > { %1445 = vsyncadd (%p1618_p5), %s178_s25, 4294965248  ;;  %s186_s20 = sand.u32 1, %s1472_s13  }
  0x55   : > { %s971_s23 = sshll.u32 %s186_s20, 7  ;;  %s187_s7 = scalar_lea.sflag [#allocation6], %s186_s20 }
  0x56   : > { %s1736_s30 = scalar_lea.vmem [#allocation5], %s971_s23 }
  0x57   : > { %1447 = dma.done.wait (%p1670_p2), %s187_s7, 2048  }
  0x58   : > { %1449 = vsyncadd (%p1670_p2), %s187_s7, 4294965248  ;;  %v1743_v0 = vld [vmem:[%s1736_s30 + $0x78] sm:$0xff]  ;;  %v1746_v1 = vld [vmem:[%s1736_s30 + $0x68] sm:$0xff]  ;;  %s973_s27 = sshll.u32 %s1496_s19, 7  ;;  %s213_s28 = sand.u32 1, %s1460_s10  }
  0x59   : > { %493 = vadd.xlane.f32.xlu0 %v1743_v0  ;;  %489 = vadd.xlane.f32.xlu1 %v1746_v1  ;;  %v1751_v2 = vld [vmem:[%s1736_s30 + $0x70] sm:$0xff]  ;;  %v1754_v3 = vld [vmem:[%s1736_s30 + $0x60] sm:$0xff]  ;;  %v1759_v4 = vld [vmem:[%s1736_s30 + $0x58] sm:$0xff]  ;;  %s972_s12 = sshll.u32 %s213_s28, 7  ;;  %s1103_s8 = smul.u32 48, %s1496_s19 }
  0x5a   : > { %v1762_v5 = vld [vmem:[%s1736_s30 + $0x50] sm:$0xff]  ;;  %v1767_v6 = vld [vmem:[%s1736_s30 + $0x48] sm:$0xff]  ;;  %v1770_v7 = vld [vmem:[%s1736_s30 + $0x40] sm:$0xff]  ;;  %s2204_s3 = scalar_lea.vmem [#allocation7], %s972_s12  ;;  %s2234_s26 = scalar_lea.sflag [#allocation4], %s213_s28 }
  0x5b   : > { %v1775_v8 = vld [vmem:[%s1736_s30 + $0x38] sm:$0xff]  ;;  %v1778_v9 = vld [vmem:[%s1736_s30 + $0x30] sm:$0xff]  ;;  %v1783_v10 = vld [vmem:[%s1736_s30 + $0x28] sm:$0xff]  ;;  %s847_s21 = sadd.s32 %s1492_s18, %s1103_s8  ;;  %s850_s6 = sshll.u32 %s2204_s3, 4  ;;  %s2227_s6 = int_to_ptr.vmem [resolvable:$true] %s850_s6 }
  0x5c   : > { %v1786_v11 = vld [vmem:[%s1736_s30 + $0x20] sm:$0xff]  ;;  %v1791_v12 = vld [vmem:[%s1736_s30 + $0x18] sm:$0xff]  ;;  %v1794_v13 = vld [vmem:[%s1736_s30 + $0x10] sm:$0xff]  ;;  %s978_s19 = sshll.u32 %s847_s21, 7  ;;  %s1360_s25 = scalar_lea.vmem %s2227_s6, 2048 }
  0x5d   : > { %491 = vadd.xlane.f32.xlu0 %v1751_v2  ;;  %487 = vadd.xlane.f32.xlu1 %v1754_v3  ;;  %v1799_v14 = vld [vmem:[%s1736_s30 + $0x8] sm:$0xff]  ;;  %v1802_v15 = vld [vmem:[%s1736_s30] sm:$0xff]  ;;  %v1823_v20 = vld [vmem:[%s1729_s1 + $0x10] sm:$0xff]  ;;  %s2224_s4 = scalar_lea.hbm %s2311_s2, %s978_s19  ;;  %p1361_p5 = scmp.ne.s32.totalorder %s2227_s6, %s1360_s25 }
  0x5e   : > { %v1807_v16 = vld [vmem:[%s1729_s1] sm:$0xff]  ;;  %v1815_v18 = vld [vmem:[%s1729_s1 + $0x8] sm:$0xff]  ;;  %v1826_v21 = vld [vmem:[%s1729_s1 + $0x50] sm:$0xff]  ;;  %p2343_p6 = scmp.ne.s32.totalorder %s2335_s24, 0  ;;  %s1514_s20 = smov [#allocation7]  }
  0x5f   : > { %v1810_v17 = vld [vmem:[%s1729_s1 + $0x40] sm:$0xff]  ;;  %v1818_v19 = vld [vmem:[%s1729_s1 + $0x48] sm:$0xff]  ;;  %v1831_v22 = vld [vmem:[%s1729_s1 + $0x18] sm:$0xff]  ;;  %s1364_s23 = sshll.u32 %s1514_s20, 4  ;;  %s1365_s23 = int_to_ptr.vmem [resolvable:$false] %s1364_s23 }
  0x60   : > { %v1834_v23 = vld [vmem:[%s1729_s1 + $0x58] sm:$0xff]  ;;  %v1839_v24 = vld [vmem:[%s1729_s1 + $0x20] sm:$0xff]  ;;  %v1847_v26 = vld [vmem:[%s1729_s1 + $0x28] sm:$0xff]  ;;  %p1362_p10 = pnand %p1361_p5, %p2343_p6  ;;  %s1366_s7 = scalar_lea.vmem %s1365_s23, 4096 }
  0x61   : > { %485 = vadd.xlane.f32.xlu0 %v1759_v4  ;;  %483 = vadd.xlane.f32.xlu1 %v1762_v5  ;;  %v1842_v25 = vld [vmem:[%s1729_s1 + $0x60] sm:$0xff]  ;;  %v1850_v27 = vld [vmem:[%s1729_s1 + $0x68] sm:$0xff]  ;;  %v1855_v28 = vld [vmem:[%s1729_s1 + $0x30] sm:$0xff]  ;;  %p1367_p8 = scmp.lt.s32.totalorder %s2227_s6, %s1365_s23  ;;  %p1368_p0 = scmp.lt.s32.totalorder %s1366_s7, %s1360_s25 }
  0x62   : > { %v1858_v29 = vld [vmem:[%s1729_s1 + $0x70] sm:$0xff]  ;;  %v1863_v30 = vld [vmem:[%s1729_s1 + $0x38] sm:$0xff]  ;;  %p1363_p2 = pneg %p1362_p10 }
  0x63   : > { %v1866_v31 = vld [vmem:[%s1729_s1 + $0x78] sm:$0xff]  ;;  %s974_s1 = sshll.u32 %s1492_s18, 7  ;;  %p1369_p9 = por %p1368_p0, %p1367_p8 }
  0x65   : > { %481 = vadd.xlane.f32.xlu0 %v1767_v6  ;;  %479 = vadd.xlane.f32.xlu1 %v1770_v7  ;;  %p1370_p4 = pnand %p1369_p9, %p1363_p2 }
  0x69   : > { %477 = vadd.xlane.f32.xlu0 %v1775_v8  ;;  %475 = vadd.xlane.f32.xlu1 %v1778_v9 }
  0x6d   : > { %473 = vadd.xlane.f32.xlu0 %v1783_v10  ;;  %471 = vadd.xlane.f32.xlu1 %v1786_v11 }
  0x71   : > { %469 = vadd.xlane.f32.xlu0 %v1791_v12  ;;  %467 = vadd.xlane.f32.xlu1 %v1794_v13 }
  0x75   : > { %465 = vadd.xlane.f32.xlu0 %v1799_v14  ;;  %463 = vadd.xlane.f32.xlu1 %v1802_v15 }
  0x79   : > { %235 = vadd.xlane.f32.xlu0 %v1807_v16  ;;  %251 = vadd.xlane.f32.xlu1 %v1810_v17 }
  0x7d   : > { %237 = vadd.xlane.f32.xlu0 %v1815_v18  ;;  %253 = vadd.xlane.f32.xlu1 %v1818_v19 }
  0x81   : > { %239 = vadd.xlane.f32.xlu0 %v1823_v20  ;;  %255 = vadd.xlane.f32.xlu1 %v1826_v21 }
  0x85   : > { %241 = vadd.xlane.f32.xlu0 %v1831_v22  ;;  %257 = vadd.xlane.f32.xlu1 %v1834_v23 }
  0x89   : > { %243 = vadd.xlane.f32.xlu0 %v1839_v24  ;;  %259 = vadd.xlane.f32.xlu1 %v1842_v25 }
  0x8d   : > { %245 = vadd.xlane.f32.xlu0 %v1847_v26  ;;  %261 = vadd.xlane.f32.xlu1 %v1850_v27 }
  0x91   : > { %247 = vadd.xlane.f32.xlu0 %v1855_v28  ;;  %263 = vadd.xlane.f32.xlu1 %v1858_v29 }
  0x95   : > { %249 = vadd.xlane.f32.xlu0 %v1863_v30  ;;  %265 = vadd.xlane.f32.xlu1 %v1866_v31 }
  0xe2   : > { %v494_v32 = vpop.xlane.xlu0 %493  ;;  %v490_v33 = vpop.xlane.xlu1 %489 }
  0xe3   : > { %v510_v34 = vmul.f32 0.0078125, %v494_v32  ;;  %v508_v35 = vmul.f32 0.0078125, %v490_v33 }
  0xe5   : > { %v1871_v36 = vsub.f32 %v1743_v0, %v510_v34  ;;  %v1874_v37 = vsub.f32 %v1746_v1, %v508_v35 }
  0xe6   : > { %v492_v38 = vpop.xlane.xlu0 %491  ;;  %v488_v39 = vpop.xlane.xlu1 %487 }
  0xe7   : > { %v509_v40 = vmul.f32 0.0078125, %v492_v38  ;;  %v542_v41 = vmul.f32 %v1871_v36, %v1871_v36  ;;  %v507_v42 = vmul.f32 0.0078125, %v488_v39  ;;  %v540_v45 = vmul.f32 %v1874_v37, %v1874_v37 }
  0xe9   : > { %v1879_v43 = vsub.f32 %v1751_v2, %v509_v40  ;;  %573 = vadd.xlane.f32.xlu0 %v542_v41  ;;  %v1882_v44 = vsub.f32 %v1754_v3, %v507_v42 }
  0xea   : > { %v486_v46 = vpop.xlane.xlu0 %485  ;;  %v484_v47 = vpop.xlane.xlu1 %483 }
  0xeb   : > { %v506_v48 = vmul.f32 0.0078125, %v486_v46  ;;  %v541_v49 = vmul.f32 %v1879_v43, %v1879_v43  ;;  %v505_v50 = vmul.f32 0.0078125, %v484_v47  ;;  %v539_v53 = vmul.f32 %v1882_v44, %v1882_v44 }
  0xed   : > { %v1889_v51 = vsub.f32 %v1759_v4, %v506_v48  ;;  %571 = vadd.xlane.f32.xlu1 %v541_v49  ;;  %569 = vadd.xlane.f32.xlu0 %v540_v45  ;;  %v1892_v52 = vsub.f32 %v1762_v5, %v505_v50 }
  0xee   : > { %v482_v54 = vpop.xlane.xlu0 %481  ;;  %v480_v55 = vpop.xlane.xlu1 %479 }
  0xef   : > { %v504_v56 = vmul.f32 0.0078125, %v482_v54  ;;  %v538_v57 = vmul.f32 %v1889_v51, %v1889_v51  ;;  %v503_v58 = vmul.f32 0.0078125, %v480_v55  ;;  %v537_v61 = vmul.f32 %v1892_v52, %v1892_v52 }
  0xf1   : > { %v1899_v59 = vsub.f32 %v1767_v6, %v504_v56  ;;  %567 = vadd.xlane.f32.xlu1 %v539_v53  ;;  %565 = vadd.xlane.f32.xlu0 %v538_v57  ;;  %v1902_v60 = vsub.f32 %v1770_v7, %v503_v58 }
  0xf2   : > { %v478_v62 = vpop.xlane.xlu0 %477  ;;  %v476_v63 = vpop.xlane.xlu1 %475 }
  0xf3   : > { %v502_v0 = vmul.f32 0.0078125, %v478_v62  ;;  %v536_v1 = vmul.f32 %v1899_v59, %v1899_v59  ;;  %v501_v2 = vmul.f32 0.0078125, %v476_v63  ;;  %v535_v5 = vmul.f32 %v1902_v60, %v1902_v60 }
  0xf5   : > { %v1909_v3 = vsub.f32 %v1775_v8, %v502_v0  ;;  %563 = vadd.xlane.f32.xlu1 %v537_v61  ;;  %561 = vadd.xlane.f32.xlu0 %v536_v1  ;;  %v1912_v4 = vsub.f32 %v1778_v9, %v501_v2 }
  0xf6   : > { %v474_v6 = vpop.xlane.xlu0 %473  ;;  %v472_v7 = vpop.xlane.xlu1 %471 }
  0xf7   : > { %v500_v32 = vmul.f32 0.0078125, %v474_v6  ;;  %v534_v33 = vmul.f32 %v1909_v3, %v1909_v3  ;;  %v499_v34 = vmul.f32 0.0078125, %v472_v7  ;;  %v533_v9 = vmul.f32 %v1912_v4, %v1912_v4 }
  0xf9   : > { %v1919_v35 = vsub.f32 %v1783_v10, %v500_v32  ;;  %559 = vadd.xlane.f32.xlu1 %v535_v5  ;;  %557 = vadd.xlane.f32.xlu0 %v534_v33  ;;  %v1922_v8 = vsub.f32 %v1786_v11, %v499_v34 }
  0xfa   : > { %v470_v38 = vpop.xlane.xlu0 %469  ;;  %v468_v39 = vpop.xlane.xlu1 %467 }
  0xfb   : > { %v498_v40 = vmul.f32 0.0078125, %v470_v38  ;;  %v532_v41 = vmul.f32 %v1919_v35, %v1919_v35  ;;  %v497_v42 = vmul.f32 0.0078125, %v468_v39  ;;  %v531_v11 = vmul.f32 %v1922_v8, %v1922_v8 }
  0xfd   : > { %v1929_v45 = vsub.f32 %v1791_v12, %v498_v40  ;;  %555 = vadd.xlane.f32.xlu1 %v533_v9  ;;  %553 = vadd.xlane.f32.xlu0 %v532_v41  ;;  %v1932_v10 = vsub.f32 %v1794_v13, %v497_v42 }
  0xfe   : > { %v466_v46 = vpop.xlane.xlu0 %465  ;;  %v464_v47 = vpop.xlane.xlu1 %463 }
  0xff   : > { %v496_v48 = vmul.f32 0.0078125, %v466_v46  ;;  %v530_v49 = vmul.f32 %v1929_v45, %v1929_v45  ;;  %v495_v50 = vmul.f32 0.0078125, %v464_v47  ;;  %v529_v13 = vmul.f32 %v1932_v10, %v1932_v10 }
 0x101   : > { %v1939_v53 = vsub.f32 %v1799_v14, %v496_v48  ;;  %551 = vadd.xlane.f32.xlu1 %v531_v11  ;;  %549 = vadd.xlane.f32.xlu0 %v530_v49  ;;  %v1942_v12 = vsub.f32 %v1802_v15, %v495_v50 }
 0x102   : > { %v236_v54 = vpop.xlane.xlu0 %235  ;;  %v252_v55 = vpop.xlane.xlu1 %251 }
 0x103   : > { %v268_v56 = vmul.f32 0.0078125, %v236_v54  ;;  %v528_v57 = vmul.f32 %v1939_v53, %v1939_v53  ;;  %v276_v58 = vmul.f32 0.0078125, %v252_v55  ;;  %v527_v15 = vmul.f32 %v1942_v12, %v1942_v12 }
 0x105   : > { %v1949_v61 = vsub.f32 %v1807_v16, %v268_v56  ;;  %547 = vadd.xlane.f32.xlu1 %v529_v13  ;;  %545 = vadd.xlane.f32.xlu0 %v528_v57  ;;  %v1952_v14 = vsub.f32 %v1810_v17, %v276_v58 }
 0x106   : > { %v238_v62 = vpop.xlane.xlu0 %237  ;;  %v254_v63 = vpop.xlane.xlu1 %253 }
 0x107   : > { %v269_v0 = vmul.f32 0.0078125, %v238_v62  ;;  %v300_v1 = vmul.f32 %v1949_v61, %v1949_v61  ;;  %v277_v2 = vmul.f32 0.0078125, %v254_v63  ;;  %v308_v17 = vmul.f32 %v1952_v14, %v1952_v14 }
 0x109   : > { %v1959_v5 = vsub.f32 %v1815_v18, %v269_v0  ;;  %543 = vadd.xlane.f32.xlu1 %v527_v15  ;;  %316 = vadd.xlane.f32.xlu0 %v300_v1  ;;  %v1962_v16 = vsub.f32 %v1818_v19, %v277_v2 }
 0x10a   : > { %v240_v6 = vpop.xlane.xlu0 %239  ;;  %v256_v7 = vpop.xlane.xlu1 %255 }
 0x10b   : > { %v270_v32 = vmul.f32 0.0078125, %v240_v6  ;;  %v301_v33 = vmul.f32 %v1959_v5, %v1959_v5  ;;  %v278_v34 = vmul.f32 0.0078125, %v256_v7  ;;  %v309_v19 = vmul.f32 %v1962_v16, %v1962_v16 }
 0x10d   : > { %v1969_v9 = vsub.f32 %v1823_v20, %v270_v32  ;;  %332 = vadd.xlane.f32.xlu1 %v308_v17  ;;  %318 = vadd.xlane.f32.xlu0 %v301_v33  ;;  %v1972_v18 = vsub.f32 %v1826_v21, %v278_v34 }
 0x10e   : > { %v242_v38 = vpop.xlane.xlu0 %241  ;;  %v258_v39 = vpop.xlane.xlu1 %257 }
 0x10f   : > { %v271_v40 = vmul.f32 0.0078125, %v242_v38  ;;  %v302_v41 = vmul.f32 %v1969_v9, %v1969_v9  ;;  %v279_v42 = vmul.f32 0.0078125, %v258_v39  ;;  %v310_v21 = vmul.f32 %v1972_v18, %v1972_v18 }
 0x111   : > { %v1979_v11 = vsub.f32 %v1831_v22, %v271_v40  ;;  %334 = vadd.xlane.f32.xlu1 %v309_v19  ;;  %320 = vadd.xlane.f32.xlu0 %v302_v41  ;;  %v1982_v20 = vsub.f32 %v1834_v23, %v279_v42  ;;  %v349_v40 = vlaneseq }
 0x112   : > { %v244_v46 = vpop.xlane.xlu0 %243  ;;  %v260_v47 = vpop.xlane.xlu1 %259 }
 0x113   : > { %v272_v48 = vmul.f32 0.0078125, %v244_v46  ;;  %v303_v49 = vmul.f32 %v1979_v11, %v1979_v11  ;;  %v280_v50 = vmul.f32 0.0078125, %v260_v47  ;;  %v311_v23 = vmul.f32 %v1982_v20, %v1982_v20 }
 0x114   : > { %v2030_v41 = vshrl.u32 %v349_v40, 7  ;;  %v2036_v46 = vstv %s974_s1 }
 0x115   : > { %v1989_v13 = vsub.f32 %v1839_v24, %v272_v48  ;;  %336 = vadd.xlane.f32.xlu1 %v310_v21  ;;  %322 = vadd.xlane.f32.xlu0 %v303_v49  ;;  %v1992_v22 = vsub.f32 %v1842_v25, %v280_v50 }
 0x116   : > { %v246_v54 = vpop.xlane.xlu0 %245  ;;  %v262_v55 = vpop.xlane.xlu1 %261  ;;  %v2034_v21 = vadd.s32 120, %v2030_v41  ;;  %v2041_v50 = vadd.s32 112, %v2030_v41 }
 0x117   : > { %v273_v56 = vmul.f32 0.0078125, %v246_v54  ;;  %v304_v57 = vmul.f32 %v1989_v13, %v1989_v13  ;;  %v281_v58 = vmul.f32 0.0078125, %v262_v55  ;;  %v312_v25 = vmul.f32 %v1992_v22, %v1992_v22 }
 0x118   : > { %v592_v49 = vadd.s32 %v2036_v46, %v2034_v21 }
 0x119   : > { %v1999_v15 = vsub.f32 %v1847_v26, %v273_v56  ;;  %338 = vadd.xlane.f32.xlu1 %v311_v23  ;;  %324 = vadd.xlane.f32.xlu0 %v304_v57  ;;  %v2002_v24 = vsub.f32 %v1850_v27, %v281_v58  ;;  %v2044_v23 = vadd.s32 104, %v2030_v41  ;;  %v591_v56 = vadd.s32 %v2036_v46, %v2041_v50 }
 0x11a   : > { %v248_v62 = vpop.xlane.xlu0 %247  ;;  %v264_v63 = vpop.xlane.xlu1 %263  ;;  %vm608_vm0 = vcmp.lt.s32.totalorder %v592_v49, 300  ;;  %v2049_v57 = vadd.s32 96, %v2030_v41  ;;  %v2069_v49 = vadd.s32 72, %v2030_v41 }
 0x11b   : > { %v274_v0 = vmul.f32 0.0078125, %v248_v62  ;;  %v305_v1 = vmul.f32 %v1999_v15, %v1999_v15  ;;  %v282_v2 = vmul.f32 0.0078125, %v264_v63  ;;  %v313_v27 = vmul.f32 %v2002_v24, %v2002_v24 }
 0x11c   : > { %v590_v58 = vadd.s32 %v2036_v46, %v2044_v23  ;;  %v2054_v63 = vadd.s32 88, %v2030_v41  ;;  %vm607_vm1 = vcmp.lt.s32.totalorder %v591_v56, 300 }
 0x11d   : > { %v2009_v17 = vsub.f32 %v1855_v28, %v274_v0  ;;  %340 = vadd.xlane.f32.xlu1 %v312_v25  ;;  %326 = vadd.xlane.f32.xlu0 %v305_v1  ;;  %v2012_v26 = vsub.f32 %v1858_v29, %v282_v2 }
 0x11e   : > { %v250_v6 = vpop.xlane.xlu0 %249  ;;  %v266_v7 = vpop.xlane.xlu1 %265  ;;  %vm606_vm2 = vcmp.lt.s32.totalorder %v590_v58, 300 }
 0x11f   : > { %v275_v32 = vmul.f32 0.0078125, %v250_v6  ;;  %v306_v33 = vmul.f32 %v2009_v17, %v2009_v17  ;;  %v283_v34 = vmul.f32 0.0078125, %v266_v7  ;;  %v314_v29 = vmul.f32 %v2012_v26, %v2012_v26 }
 0x121   : > { %v2019_v19 = vsub.f32 %v1863_v30, %v275_v32  ;;  %342 = vadd.xlane.f32.xlu1 %v313_v27  ;;  %328 = vadd.xlane.f32.xlu0 %v306_v33  ;;  %v2022_v28 = vsub.f32 %v1866_v31, %v283_v34  ;;  %v589_v27 = vadd.s32 %v2036_v46, %v2049_v57 }
 0x122   : > { %v588_v33 = vadd.s32 %v2036_v46, %v2054_v63 }
 0x123   : > { %v307_v38 = vmul.f32 %v2019_v19, %v2019_v19  ;;  %v315_v39 = vmul.f32 %v2022_v28, %v2022_v28  ;;  %vm605_vm3 = vcmp.lt.s32.totalorder %v589_v27, 300 }
 0x124   : > { %vm604_vm4 = vcmp.lt.s32.totalorder %v588_v33, 300 }
 0x125   : > { %344 = vadd.xlane.f32.xlu1 %v314_v29  ;;  %330 = vadd.xlane.f32.xlu0 %v307_v38 }
 0x129   : > { %346 = vadd.xlane.f32.xlu1 %v315_v39  ;;  %v2063_v39 = vadd.s32 80, %v2030_v41 }
 0x172   : > { %v574_v30 = vpop.xlane.xlu0 %573 }
 0x173   : > { %1240 = vrsqrt.f32 %v574_v30 }
 0x176   : > { %v572_v31 = vpop.xlane.xlu1 %571  ;;  %v570_v42 = vpop.xlane.xlu0 %569 }
 0x177   : > { %1242 = vrsqrt.f32 %v572_v31 }
 0x178   : > { %1244 = vrsqrt.f32 %v570_v42 }
 0x17a   : > { %v568_v47 = vpop.xlane.xlu1 %567  ;;  %v566_v48 = vpop.xlane.xlu0 %565 }
 0x17b   : > { %1246 = vrsqrt.f32 %v568_v47 }
 0x17c   : > { %1248 = vrsqrt.f32 %v566_v48 }
 0x17e   : > { %v564_v54 = vpop.xlane.xlu1 %563  ;;  %v562_v55 = vpop.xlane.xlu0 %561 }
 0x17f   : > { %1250 = vrsqrt.f32 %v564_v54 }
 0x180   : > { %v1241_v25 = vpop.eup %1240  ;;  %1252 = vrsqrt.f32 %v562_v55 }
 0x181   : > { %v640_v62 = vsel %vm608_vm0, %v1241_v25, 0.0  ;;  %v586_v25 = vadd.s32 %v2036_v46, %v2069_v49 }
 0x182   : > { %v560_v0 = vpop.xlane.xlu1 %559  ;;  %v558_v1 = vpop.xlane.xlu0 %557  ;;  %v656_v2 = vmul.f32 %v640_v62, %v1871_v36  ;;  %v358_v62 = vadd.s32 64, %v2030_v41 }
 0x183   : > { %1254 = vrsqrt.f32 %v560_v0  ;;  %vm602_vm6 = vcmp.lt.s32.totalorder %v586_v25, 300 }
 0x184   : > { %v1243_v6 = vpop.eup %1242  ;;  %1015 = vmatprep.subr.mxu0 %v656_v2  ;;  %1071 = vmatprep.subr.mxu1 %v656_v2  ;;  %1256 = vrsqrt.f32 %v558_v1 }
 0x185   : > { %v1245_v7 = vpop.eup %1244  ;;  %1016 = vmatpush3.xpose.msra.mxu0 %v656_v2  ;;  %1087 = vmatpush3.xpose.msra.mxu1 %v656_v2  ;;  %v639_v32 = vsel %vm607_vm1, %v1243_v6, 0.0  ;;  %v585_v6 = vadd.s32 %v2036_v46, %v358_v62 }
 0x186   : > { %v556_v34 = vpop.xlane.xlu1 %555  ;;  %v554_v29 = vpop.xlane.xlu0 %553  ;;  %v655_v36 = vmul.f32 %v639_v32, %v1879_v43  ;;  %v638_v38 = vsel %vm606_vm2, %v1245_v7, 0.0  ;;  %v587_v43 = vadd.s32 %v2036_v46, %v2063_v39  ;;  %v2084_v7 = vadd.s32 56, %v2030_v41 }
 0x187   : > { %v654_v30 = vmul.f32 %v638_v38, %v1874_v37  ;;  %1258 = vrsqrt.f32 %v556_v34  ;;  %vm601_vm7 = vcmp.lt.s32.totalorder %v585_v6, 300 }
 0x188   : > { %v1247_v40 = vpop.eup %1246  ;;  %1017 = vmatprep.subr.mxu0 %v655_v36  ;;  %1072 = vmatprep.subr.mxu1 %v655_v36  ;;  %vm603_vm5 = vcmp.lt.s32.totalorder %v587_v43, 300  ;;  %v584_v38 = vadd.s32 %v2036_v46, %v2084_v7 }
 0x189   : > { %1018 = vmatpush3.xpose.msra.mxu0 %v655_v36  ;;  %1088 = vmatpush3.xpose.msra.mxu1 %v655_v36  ;;  %v637_v31 = vsel %vm605_vm3, %v1247_v40, 0.0  ;;  %v1249_v42 = vpop.eup %1248  ;;  %v2093_v40 = vadd.s32 48, %v2030_v41 }
 0x18a   : > { %v552_v47 = vpop.xlane.xlu1 %551  ;;  %1019 = vmatprep.subr.mxu0 %v654_v30  ;;  %1073 = vmatprep.subr.mxu1 %v654_v30  ;;  %v550_v48 = vpop.xlane.xlu0 %549  ;;  %v653_v54 = vmul.f32 %v637_v31, %v1882_v44  ;;  %v636_v37 = vsel %vm604_vm4, %v1249_v42, 0.0  ;;  %vm600_vm8 = vcmp.lt.s32.totalorder %v584_v38, 300 }
 0x18b   : > { %v652_v0 = vmul.f32 %v636_v37, %v1889_v51  ;;  %v2105_v37 = vadd.s32 40, %v2030_v41 }
 0x18c   : > { %v1251_v55 = vpop.eup %1250 }
 0x18d   : > { %1020 = vmatpush3.xpose.msra.mxu0 %v654_v30  ;;  %1089 = vmatpush3.xpose.msra.mxu1 %v654_v30  ;;  %v635_v44 = vsel %vm603_vm5, %v1251_v55, 0.0  ;;  %v1253_v1 = vpop.eup %1252 }
 0x18e   : > { %v2072_v56 = vpop.xlane.xlu1 %547  ;;  %1021 = vmatprep.subr.mxu0 %v653_v54  ;;  %1074 = vmatprep.subr.mxu1 %v653_v54  ;;  %v2074_v58 = vpop.xlane.xlu0 %545  ;;  %v651_v51 = vmul.f32 %v635_v44, %v1892_v52  ;;  %v634_v32 = vsel %vm602_vm6, %v1253_v1, 0.0  ;;  %v582_v1 = vadd.s32 %v2036_v46, %v2105_v37 }
 0x18f   : > { %v650_v52 = vmul.f32 %v634_v32, %v1899_v59  ;;  %v2123_v32 = vadd.s32 24, %v2030_v41 }
 0x190   : > { %v1255_v33 = vpop.eup %1254  ;;  %vm598_vm12 = vcmp.lt.s32.totalorder %v582_v1, 300  ;;  %v351_v1 = vadd.s32 8, %v2030_v41 }
 0x191   : > { %1022 = vmatpush3.xpose.msra.mxu0 %v653_v54  ;;  %1090 = vmatpush3.xpose.msra.mxu1 %v653_v54  ;;  %v633_v30 = vsel %vm601_vm7, %v1255_v33, 0.0  ;;  %v1257_v31 = vpop.eup %1256  ;;  %v583_v54 = vadd.s32 %v2036_v46, %v2093_v40 }
 0x192   : > { %v2080_v2 = vpop.xlane.xlu1 %543  ;;  %1023 = vmatprep.subr.mxu0 %v652_v0  ;;  %1075 = vmatprep.subr.mxu1 %v652_v0  ;;  %v317_v27 = vpop.xlane.xlu0 %316  ;;  %v632_v55 = vsel %vm600_vm8, %v1257_v31, 0.0 }
 0x193   : > { %1260 = vrsqrt.f32 %v317_v27  ;;  %vm599_vm9 = vcmp.lt.s32.totalorder %v583_v54, 300  ;;  %v2116_v27 = vadd.s32 32, %v2030_v41 }
 0x194   : > { %1262 = vrsqrt.f32 %v554_v29  ;;  %v2096_v29 = vstv %s973_s27  ;;  %v1259_v25 = vpop.eup %1258 }
 0x195   : > { %1024 = vmatpush3.xpose.msra.mxu0 %v652_v0  ;;  %1091 = vmatpush3.xpose.msra.mxu1 %v652_v0  ;;  %v367_v59 = vadd.s32 %v2096_v29, %v2030_v41  ;;  %v375_v44 = vadd.s32 %v2096_v29, %v358_v62  ;;  %v581_v38 = vadd.s32 %v2036_v46, %v2116_v27 }
 0x196   : > { %v333_v34 = vpop.xlane.xlu1 %332  ;;  %1025 = vmatprep.subr.mxu0 %v651_v51  ;;  %1076 = vmatprep.subr.mxu1 %v651_v51  ;;  %v2088_v36 = vpop.xlane.xlu0 %318 }
 0x197   : > { %1264 = vrsqrt.f32 %v333_v34  ;;  %vm383_vm10 = vcmp.lt.s32.totalorder %v367_v59, 300  ;;  %vm391_vm11 = vcmp.lt.s32.totalorder %v375_v44, 300  ;;  %vm597_vm13 = vcmp.lt.s32.totalorder %v581_v38, 300 }
 0x198   : > { %1266 = vrsqrt.f32 %v552_v47  ;;  %v649_v47 = vmul.f32 %v633_v30, %v1902_v60 }
 0x199   : > { %1026 = vmatpush3.xpose.msra.mxu0 %v651_v51  ;;  %1092 = vmatpush3.xpose.msra.mxu1 %v651_v51  ;;  %1268 = vrsqrt.f32 %v550_v48  ;;  %v648_v48 = vmul.f32 %v632_v55, %v1909_v3  ;;  %v631_v51 = vsel %vm599_vm9, %v1259_v25, 0.0  ;;  %v580_v55 = vadd.s32 %v2036_v46, %v2123_v32 }
 0x19a   : > { %v2098_v42 = vpop.xlane.xlu1 %334  ;;  %1027 = vmatprep.subr.mxu0 %v650_v52  ;;  %1077 = vmatprep.subr.mxu1 %v650_v52  ;;  %v2100_v43 = vpop.xlane.xlu0 %320  ;;  %1270 = vrsqrt.f32 %v2072_v56  ;;  %v647_v56 = vmul.f32 %v631_v51, %v1912_v4 }
 0x19b   : > { %1272 = vrsqrt.f32 %v2074_v58  ;;  %vm596_vm14 = vcmp.lt.s32.totalorder %v580_v55, 300 }
 0x19c   : > { %1274 = vrsqrt.f32 %v2080_v2  ;;  %v578_v2 = vadd.s32 %v2036_v46, %v351_v1 }
 0x19d   : > { %1028 = vmatpush3.xpose.msra.mxu0 %v650_v52  ;;  %1093 = vmatpush3.xpose.msra.mxu1 %v650_v52  ;;  %1276 = vrsqrt.f32 %v2088_v36 }
 0x19e   : > { %v2110_v0 = vpop.xlane.xlu1 %336  ;;  %1029 = vmatprep.subr.mxu0 %v649_v47  ;;  %1078 = vmatprep.subr.mxu1 %v649_v47  ;;  %v2118_v60 = vpop.xlane.xlu0 %322  ;;  %1278 = vrsqrt.f32 %v2098_v42  ;;  %vm594_vm0 = vcmp.lt.s32.totalorder %v578_v2, 300 }
 0x19f   : > { %1280 = vrsqrt.f32 %v2100_v43 }
 0x1a0   : > { %v1261_v6 = vpop.eup %1260  ;;  %1282 = vrsqrt.f32 %v2110_v0 }
 0x1a1   : > { %1030 = vmatpush3.xpose.msra.mxu0 %v649_v47  ;;  %1094 = vmatpush3.xpose.msra.mxu1 %v649_v47  ;;  %v1263_v62 = vpop.eup %1262  ;;  %v415_v34 = vsel %vm383_vm10, %v1261_v6, 0.0  ;;  %1284 = vrsqrt.f32 %v2118_v60  ;;  %v368_v60 = vadd.s32 %v2096_v29, %v351_v1 }
 0x1a2   : > { %v339_v33 = vpop.xlane.xlu1 %338  ;;  %1031 = vmatprep.subr.mxu0 %v648_v48  ;;  %1079 = vmatprep.subr.mxu1 %v648_v48  ;;  %v431_v3 = vmul.f32 %v415_v34, %v1949_v61  ;;  %v630_v31 = vsel %vm598_vm12, %v1263_v62, 0.0  ;;  %v325_v59 = vpop.xlane.xlu0 %324  ;;  %v2134_v61 = vadd.s32 16, %v2030_v41 }
 0x1a3   : > { %v646_v58 = vmul.f32 %v630_v31, %v1919_v35  ;;  %1286 = vrsqrt.f32 %v339_v33  ;;  %vm384_vm2 = vcmp.lt.s32.totalorder %v368_v60, 300 }
 0x1a4   : > { %v1265_v52 = vpop.eup %1264  ;;  %1047 = vmatprep.mubr.f32.mxu0 %v431_v3  ;;  %v577_v3 = vadd.s32 %v2036_v46, %v2030_v41  ;;  %1288 = vrsqrt.f32 %v325_v59  ;;  %v370_v59 = vadd.s32 %v2096_v29, %v2123_v32 }
 0x1a5   : > { %1032 = vmatpush3.xpose.msra.mxu0 %v648_v48  ;;  %v423_v30 = vsel %vm391_vm11, %v1265_v52, 0.0  ;;  %v1267_v54 = vpop.eup %1266  ;;  %1095 = vmatpush3.xpose.msra.mxu1 %v648_v48  ;;  %v376_v52 = vadd.s32 %v2096_v29, %v2069_v49  ;;  %v378_v49 = vadd.s32 %v2096_v29, %v2054_v63  ;;  %v372_v63 = vadd.s32 %v2096_v29, %v2105_v37 }
 0x1a6   : > { %1033 = vmatprep.subr.mxu0 %v647_v56  ;;  %v439_v47 = vmul.f32 %v423_v30, %v1952_v14  ;;  %v341_v4 = vpop.xlane.xlu1 %340  ;;  %1080 = vmatprep.subr.mxu1 %v647_v56  ;;  %v629_v25 = vsel %vm597_vm13, %v1267_v54, 0.0  ;;  %v1269_v44 = vpop.eup %1268  ;;  %v579_v14 = vadd.s32 %v2036_v46, %v2134_v61  ;;  %vm593_vm1 = vcmp.lt.s32.totalorder %v577_v3, 300 }
 0x1a7   : > { %v327_v48 = vpop.xlane.xlu0 %326  ;;  %v645_v6 = vmul.f32 %v629_v25, %v1922_v8  ;;  %v628_v35 = vsel %vm596_vm14, %v1269_v44, 0.0  ;;  %v1271_v62 = vpop.eup %1270  ;;  %1290 = vrsqrt.f32 %v341_v4  ;;  %v377_v30 = vadd.s32 %v2096_v29, %v2063_v39 }
 0x1a8   : > { %1059 = vmatprep.mubr.f32.mxu1 %v439_v47  ;;  %vm595_vm15 = vcmp.lt.s32.totalorder %v579_v14, 300  ;;  %v644_v34 = vmul.f32 %v628_v35, %v1929_v45  ;;  %v1273_v38 = vpop.eup %1272  ;;  %1292 = vrsqrt.f32 %v327_v48  ;;  %vm392_vm3 = vcmp.lt.s32.totalorder %v376_v52, 300 }
 0x1a9   : > { %1034 = vmatpush3.xpose.msra.mxu0 %v647_v56  ;;  %1096 = vmatpush3.xpose.msra.mxu1 %v647_v56  ;;  %v627_v8 = vsel %vm595_vm15, %v1271_v62, 0.0  ;;  %v626_v43 = vsel %vm594_vm0, %v1273_v38, 0.0  ;;  %v1275_v0 = vpop.eup %1274  ;;  %v369_v56 = vadd.s32 %v2096_v29, %v2134_v61  ;;  %v371_v39 = vadd.s32 %v2096_v29, %v2116_v27 }
 0x1aa   : > { %1035 = vmatprep.subr.mxu0 %v646_v58  ;;  %1081 = vmatprep.subr.mxu1 %v646_v58  ;;  %v343_v51 = vpop.xlane.xlu1 %342  ;;  %v643_v45 = vmul.f32 %v627_v8, %v1932_v10  ;;  %v642_v46 = vmul.f32 %v626_v43, %v1939_v53  ;;  %v625_v10 = vsel %vm593_vm1, %v1275_v0, 0.0  ;;  %v1277_v31 = vpop.eup %1276  ;;  %vm393_vm5 = vcmp.lt.s32.totalorder %v377_v30, 300 }
 0x1ab   : > { %v329_v36 = vpop.xlane.xlu0 %328  ;;  %1294 = vrsqrt.f32 %v343_v51  ;;  %v1279_v53 = vpop.eup %1278  ;;  %v641_v54 = vmul.f32 %v625_v10, %v1942_v12  ;;  %vm385_vm4 = vcmp.lt.s32.totalorder %v369_v56, 300  ;;  %v379_v12 = vadd.s32 %v2096_v29, %v2049_v57 }
 0x1ac   : > { %1296 = vrsqrt.f32 %v329_v36  ;;  %v1281_v47 = vpop.eup %1280  ;;  %v416_v32 = vsel %vm384_vm2, %v1277_v31, 0.0  ;;  %vm386_vm6 = vcmp.lt.s32.totalorder %v370_v59, 300  ;;  %vm394_vm7 = vcmp.lt.s32.totalorder %v378_v49, 300 }
 0x1ad   : > { %1036 = vmatpush3.xpose.msra.mxu0 %v646_v58  ;;  %1097 = vmatpush3.xpose.msra.mxu1 %v646_v58  ;;  %v1283_v55 = vpop.eup %1282  ;;  %v424_v58 = vsel %vm392_vm3, %v1279_v53, 0.0  ;;  %v417_v25 = vsel %vm385_vm4, %v1281_v47, 0.0  ;;  %vm387_vm8 = vcmp.lt.s32.totalorder %v371_v39, 300  ;;  %v380_v14 = vadd.s32 %v2096_v29, %v2044_v23 }
 0x1ae   : > { %1037 = vmatprep.subr.mxu0 %v645_v6  ;;  %1082 = vmatprep.subr.mxu1 %v645_v6  ;;  %v345_v42 = vpop.xlane.xlu1 %344  ;;  %v1285_v61 = vpop.eup %1284  ;;  %v425_v44 = vsel %vm393_vm5, %v1283_v55, 0.0  ;;  %v373_v57 = vadd.s32 %v2096_v29, %v2093_v40  ;;  %v432_v48 = vmul.f32 %v416_v32, %v1959_v5  ;;  %vm395_vm9 = vcmp.lt.s32.totalorder %v379_v12, 300 }
 0x1af   : > { %v331_v41 = vpop.xlane.xlu0 %330  ;;  %1298 = vrsqrt.f32 %v345_v42  ;;  %v381_v37 = vadd.s32 %v2096_v29, %v2041_v50  ;;  %v440_v51 = vmul.f32 %v424_v58, %v1962_v16  ;;  %v433_v35 = vmul.f32 %v417_v25, %v1969_v9 }
 0x1b0   : > { %1300 = vrsqrt.f32 %v331_v41  ;;  %v1287_v4 = vpop.eup %1286  ;;  %v418_v62 = vsel %vm386_vm6, %v1285_v61, 0.0  ;;  %vm388_vm10 = vcmp.lt.s32.totalorder %v372_v63, 300  ;;  %v441_v40 = vmul.f32 %v425_v44, %v1972_v18 }
 0x1b1   : > { %1038 = vmatpush3.xpose.msra.mxu0 %v645_v6  ;;  %1098 = vmatpush3.xpose.msra.mxu1 %v645_v6  ;;  %v1289_v27 = vpop.eup %1288  ;;  %v426_v2 = vsel %vm394_vm7, %v1287_v4, 0.0  ;;  %vm396_vm11 = vcmp.lt.s32.totalorder %v380_v14, 300  ;;  %vm389_vm12 = vcmp.lt.s32.totalorder %v373_v57, 300  ;;  %v382_v9 = vadd.s32 %v2096_v29, %v2034_v21 }
 0x1b2   : > { %1039 = vmatprep.subr.mxu0 %v644_v34  ;;  %1083 = vmatprep.subr.mxu1 %v644_v34  ;;  %v347_v33 = vpop.xlane.xlu1 %346  ;;  %v419_v5 = vsel %vm387_vm8, %v1289_v27, 0.0  ;;  %v434_v18 = vmul.f32 %v418_v62, %v1979_v11  ;;  %vm397_vm13 = vcmp.lt.s32.totalorder %v381_v37, 300  ;;  %v442_v38 = vmul.f32 %v426_v2, %v1982_v20 }
 0x1b3   : > { %1302 = vrsqrt.f32 %v347_v33  ;;  %v435_v36 = vmul.f32 %v419_v5, %v1989_v13  ;;  %vm398_vm15 = vcmp.lt.s32.totalorder %v382_v9, 300 }
 0x1b4   : > { %v1291_v1 = vpop.eup %1290 }
 0x1b5   : > { %1040 = vmatpush3.xpose.msra.mxu0 %v644_v34  ;;  %1099 = vmatpush3.xpose.msra.mxu1 %v644_v34  ;;  %v1293_v6 = vpop.eup %1292  ;;  %v374_v34 = vadd.s32 %v2096_v29, %v2084_v7  ;;  %v427_v16 = vsel %vm395_vm9, %v1291_v1, 0.0 }
 0x1b6   : > { %1041 = vmatprep.subr.mxu0 %v643_v45  ;;  %1084 = vmatprep.subr.mxu1 %v643_v45  ;;  %v420_v7 = vsel %vm388_vm10, %v1293_v6, 0.0  ;;  %v443_v42 = vmul.f32 %v427_v16, %v1992_v22 }
 0x1b7   : > { %vm390_vm14 = vcmp.lt.s32.totalorder %v374_v34, 300  ;;  %v436_v11 = vmul.f32 %v420_v7, %v1999_v15 }
 0x1b8   : > { %v1295_v23 = vpop.eup %1294 }
 0x1b9   : > { %1042 = vmatpush3.xpose.msra.mxu0 %v643_v45  ;;  %1100 = vmatpush3.xpose.msra.mxu1 %v643_v45  ;;  %v1297_v50 = vpop.eup %1296  ;;  %v428_v45 = vsel %vm396_vm11, %v1295_v23, 0.0 }
 0x1ba   : > { %1043 = vmatprep.subr.mxu0 %v642_v46  ;;  %1085 = vmatprep.subr.mxu1 %v642_v46  ;;  %v421_v43 = vsel %vm389_vm12, %v1297_v50, 0.0  ;;  %v444_v20 = vmul.f32 %v428_v45, %v2002_v24 }
 0x1bb   : > { %v437_v13 = vmul.f32 %v421_v43, %v2009_v17 }
 0x1bc   : > { %v1299_v8 = vpop.eup %1298 }
 0x1bd   : > { %1044 = vmatpush3.xpose.msra.mxu0 %v642_v46  ;;  %1101 = vmatpush3.xpose.msra.mxu1 %v642_v46  ;;  %v1301_v3 = vpop.eup %1300  ;;  %v429_v21 = vsel %vm397_vm13, %v1299_v8, 0.0 }
 0x1be   : > { %1045 = vmatprep.subr.mxu0 %v641_v54  ;;  %1086 = vmatprep.subr.mxu1 %v641_v54  ;;  %v422_v29 = vsel %vm390_vm14, %v1301_v3, 0.0  ;;  %v445_v22 = vmul.f32 %v429_v21, %v2012_v26 }
 0x1bf   : > { %v438_v41 = vmul.f32 %v422_v29, %v2019_v19 }
 0x1c0   : > { %v1303_v0 = vpop.eup %1302 }
 0x1c1   : > { %1046 = vmatpush3.xpose.msra.mxu0 %v641_v54  ;;  %1102 = vmatpush3.xpose.msra.mxu1 %v641_v54  ;;  %v430_v60 = vsel %vm398_vm15, %v1303_v0, 0.0 }
 0x1c2   : > { %v446_v46 = vmul.f32 %v430_v60, %v2022_v28 }
 0x1c4   : > { %1048 = vmatmul.mubr.f32.vlgmr.msra.gmra.mxu0 %v432_v48  ;;  %1060 = vmatmul.mubr.f32.vlgmr.msra.gmra.mxu1 %v440_v51 }
 0x1c5   : > { %1050 = vmatprep.mubr.f32.mxu0 %v433_v35  ;;  %1062 = vmatprep.mubr.f32.mxu1 %v441_v40 }
 0x1c8   : > { %1051 = vmatmul.mubr.f32.gmra.mxu0 %v434_v18  ;;  %1063 = vmatmul.mubr.f32.gmra.mxu1 %v442_v38 }
 0x1c9   : > { %1053 = vmatprep.mubr.f32.mxu0 %v435_v36  ;;  %1065 = vmatprep.mubr.f32.mxu1 %v443_v42 }
 0x1cc   : > { %1054 = vmatmul.mubr.f32.gmra.mxu0 %v436_v11  ;;  %1066 = vmatmul.mubr.f32.gmra.mxu1 %v444_v20 }
 0x1cd   : > { %1056 = vmatprep.mubr.f32.mxu0 %v437_v13  ;;  %1068 = vmatprep.mubr.f32.mxu1 %v445_v22 }
 0x1d0   : > { %1057 = vmatmul.mubr.f32.gmra.mxu0 %v438_v41  ;;  %1069 = vmatmul.mubr.f32.gmra.mxu1 %v446_v46 }
 0x284   : > { %v1049_v15 = vpop.f32.mrf.mxu0  ;;  %v1061_v17 = vpop.f32.mrf.mxu1 }
 0x285   : > { %v803_v24 = vmax.f32 %v1049_v15, 0.0  ;;  %v811_v33 = vmax.f32 %v1061_v17, 0.0 }
 0x286   : > { %v723_v10 = vpop.f32.mrf.mxu0  ;;  %v763_v19 = vpop.f32.mrf.mxu1 }
 0x287   : > { %819 = vst [vmem:[%s2204_s3 + $0x8] sm:$0xff] %v803_v24  ;;  %v802_v26 = vmax.f32 %v723_v10, 0.0  ;;  %827 = vst [vmem:[%s2204_s3 + $0x48] sm:$0xff] %v811_v33  ;;  %v810_v28 = vmax.f32 %v763_v19, 0.0 }
 0x288   : > { %v1052_v52 = vpop.f32.mrf.mxu0  ;;  %v1064_v30 = vpop.f32.mrf.mxu1 }
 0x289   : > { %818 = vst [vmem:[%s2204_s3] sm:$0xff] %v802_v26  ;;  %v805_v56 = vmax.f32 %v1052_v52, 0.0  ;;  %826 = vst [vmem:[%s2204_s3 + $0x40] sm:$0xff] %v810_v28  ;;  %v813_v31 = vmax.f32 %v1064_v30, 0.0 }
 0x28a   : > { %v733_v53 = vpop.f32.mrf.mxu0  ;;  %v773_v59 = vpop.f32.mrf.mxu1 }
 0x28b   : > { %821 = vst [vmem:[%s2204_s3 + $0x18] sm:$0xff] %v805_v56  ;;  %v804_v54 = vmax.f32 %v733_v53, 0.0  ;;  %829 = vst [vmem:[%s2204_s3 + $0x58] sm:$0xff] %v813_v31  ;;  %v812_v49 = vmax.f32 %v773_v59, 0.0 }
 0x28c   : > { %v1055_v47 = vpop.f32.mrf.mxu0  ;;  %v1067_v55 = vpop.f32.mrf.mxu1 }
 0x28d   : > { %820 = vst [vmem:[%s2204_s3 + $0x10] sm:$0xff] %v804_v54  ;;  %v807_v39 = vmax.f32 %v1055_v47, 0.0  ;;  %828 = vst [vmem:[%s2204_s3 + $0x50] sm:$0xff] %v812_v49  ;;  %v815_v12 = vmax.f32 %v1067_v55, 0.0 }
 0x28e   : > { %v743_v61 = vpop.f32.mrf.mxu0  ;;  %v783_v63 = vpop.f32.mrf.mxu1 }
 0x28f   : > { %823 = vst [vmem:[%s2204_s3 + $0x28] sm:$0xff] %v807_v39  ;;  %v806_v32 = vmax.f32 %v743_v61, 0.0  ;;  %831 = vst [vmem:[%s2204_s3 + $0x68] sm:$0xff] %v815_v12  ;;  %v814_v4 = vmax.f32 %v783_v63, 0.0 }
 0x290   : > { %v1058_v58 = vpop.f32.mrf.mxu0  ;;  %v1070_v27 = vpop.f32.mrf.mxu1 }
 0x291   : > { %822 = vst [vmem:[%s2204_s3 + $0x20] sm:$0xff] %v806_v32  ;;  %v809_v25 = vmax.f32 %v1058_v58, 0.0  ;;  %830 = vst [vmem:[%s2204_s3 + $0x60] sm:$0xff] %v814_v4  ;;  %v817_v44 = vmax.f32 %v1070_v27, 0.0 }
 0x292   : > { %v753_v14 = vpop.f32.mrf.mxu0  ;;  %v793_v1 = vpop.f32.mrf.mxu1 }
 0x293   : > { %825 = vst [vmem:[%s2204_s3 + $0x38] sm:$0xff] %v809_v25  ;;  %v808_v57 = vmax.f32 %v753_v14, 0.0  ;;  %833 = vst [vmem:[%s2204_s3 + $0x78] sm:$0xff] %v817_v44  ;;  %v816_v48 = vmax.f32 %v793_v1, 0.0 }
 0x295   : > { %824 = vst [vmem:[%s2204_s3 + $0x30] sm:$0xff] %v808_v57  ;;  %832 = vst [vmem:[%s2204_s3 + $0x70] sm:$0xff] %v816_v48 }
 0x296   : > { %1373 = shalt.err (!%p1370_p4)
}
 0x297   : > { %s1374_s30 = scalar_lea.hbm %s2224_s4, 2048  ;;  %s1378_s28 = scalar_lea.hbm %s2311_s2, 18432 }
 0x298   : > { %p1375_p1 = scmp.ne.s32.totalorder %s2224_s4, %s1374_s30  ;;  %p1379_p3 = scmp.lt.s32.totalorder %s2224_s4, %s2311_s2 }
 0x299   : > { %p1380_p12 = scmp.lt.s32.totalorder %s1378_s28, %s1374_s30 }
 0x29a   : > { %p1376_p11 = pnand %p1375_p1, %p2343_p6 }
 0x29b   : > { %p1381_p13 = por %p1380_p12, %p1379_p3 }
 0x29c   : > { %p1377_p7 = pneg %p1376_p11 }
 0x29e   : > { %p1382_p5 = pnand %p1381_p13, %p1377_p7 }
 0x2a0   : > { %1385 = shalt.err (!%p1382_p5)
}
 0x2a1   : > { %s1515_s8 = smov 128   ;;  %s1516_s21 = smov 384  }
 0x2a2   : > { %s1517_s19 = smov 8  }
 0x2a3   : > { %1108 = dma.vmem_to_hbm [thread:$0]  (%p2343_p6), %s2227_s6, 2048, %s2224_s4, %s2234_s26, %s1515_s8, %s1516_s21, %s1517_s19  }
 0x2a4 PF: > { %p1122_p10 = scmp.ge.s32.totalorder %s1508_s22, 2  ;;  %s865_s18 = sand.u32 1, %s1456_s9  }
 0x2a5   : > { %p2344_p2 = scmp.ne.s32.totalorder %s2338_s5, 0  ;;  %s866_s29 = scalar_lea.sflag [#allocation4], %s865_s18 }
 0x2a7   : > { %p1118_p8 = pnand %p1122_p10, %p2344_p2 }
 0x2a9   : > { %p1119_p0 = pneg %p1118_p8 }
 0x2ab   : > { %1451 = dma.done.wait (%p1119_p0), %s866_s29, 2048  }
 0x2ac   : > { %1453 = vsyncadd (%p1119_p0), %s866_s29, 4294965248  ;;  %s21_s22 = sadd.s32 1, %s1508_s22   ;;  %s2346_s24 = sld [smem:[#allocation15_spill]] }
 0x2ad   : > { %p2262_p9 = scmp.ge.s32.totalorder %s21_s22, 11   ;;  %s2347_s18 = sld [smem:[#allocation11_spill]] }
 0x2ae   : > { %s2348_s19 = sld [smem:[#allocation12_spill]]  ;;  %s2351_s9 = smov %s1460_s10 }
 0x2af   : > { %s2349_s20 = sld [smem:[#allocation13_spill]]  ;;  %s2352_s10 = smov %s1464_s11 }
 0x2b0   : > { %s2350_s21 = sld [smem:[#allocation14_spill]]  ;;  %s2353_s11 = smov %s1697_s0 }
 0x2b1   : > { %s2354_s12 = smov %s1472_s13  ;;  %s2355_s13 = smov %s1476_s14 }
 0x2b2   : > { %s2356_s14 = smov %s1679_s15  ;;  %s2357_s15 = smov %s1484_s16 }
 0x2b3   : > { %s2358_s16 = smov %s1488_s17  ;;  %s2359_s17 = smov %s2346_s24 }
 0x2b4   :  { %20 = sbr.rel (!%p2262_p9) target bundleno = 15 (0xf), region = 86 }
 0x2b9   :  { %871 = vsyncpa [#allocation3], 1 }
 0x2ba   :  { %873 = vsyncpa [#allocation3 + $0x1], 1 }
 0x2bb   :  { %874 = vsyncpa [#allocation6], 1 }
 0x2bc   :  { %876 = vsyncpa [#allocation6 + $0x1], 1 }
 0x2bd   :  { %877 = vsyncpa [#allocation4], 1 }
 0x2be   :  { %879 = vsyncpa [#allocation4 + $0x1], 1 }

</bundles_post_ra>
